<compile_context>
chip_gen: v7x
topology: tpu7x:2x2x1
jax: 0.10.0
libtpu: 0.0.40
codegen_flags: <defaults>
</compile_context>

<pallas_src>
import jax
import jax.numpy as jnp
from jax.experimental import pallas as pl
from jax.experimental.pallas import tpu as pltpu


def _copy_kernel(x_ref, o_ref):
    # Pure pass-through of the current tile.
    o_ref[...] = x_ref[...]


_MAX_COLS = 8192                     # cap on the lane-axis width (multiple of 128)
_TARGET_TILE_BYTES = 4 << 20         # ~4 MiB per tile -> ~16 MiB double-buffered in+out
_VMEM_LIMIT_BYTES = 32 << 20         # explicit scoped-VMEM limit (safe on v5e/v6e/v7x)
_MAX_SINGLE_BLOCK_BYTES = 2 << 20    # ragged-shape fallback: single-block cap


def _pick_cols(total: int) -> int:
    """Largest multiple of 128 that divides `total`, capped at _MAX_COLS (0 if none)."""
    max_k = min(_MAX_COLS, total) // 128
    for k in range(max_k, 0, -1):
        if total % (128 * k) == 0:
            return 128 * k
    return 0


def _pick_tile_rows(rows: int, cols: int, itemsize: int) -> int:
    """Row-tile size: multiple of the sublane packing, ~4 MiB per tile, and
    small enough to yield >= 2 grid programs whenever rows permit (so v7x's
    two TensorCores can split the copy)."""
    sublane = max(8, 32 // itemsize)          # 8 for f32, 16 for bf16, 32 for int8
    budget_rows = _TARGET_TILE_BYTES // max(1, cols * itemsize)
    tile = max(sublane, (budget_rows // sublane) * sublane)
    if rows >= 2 * sublane:
        # Ensure at least two programs on the (parallel) row axis.
        half = (((rows + 1) // 2) + sublane - 1) // sublane * sublane
        tile = min(tile, half)
    # Never exceed the full row extent (block == full dim is always legal).
    return min(tile, rows)


def _pallas_identity_copy(x: jax.Array) -> jax.Array:
    """Tiled, pipelined HBM->VMEM->HBM copy of x (exact identity)."""
    orig_shape = x.shape
    total = x.size
    itemsize = jnp.dtype(x.dtype).itemsize

    cols = _pick_cols(total)
    if cols == 0:
        # total not divisible by 128: lane-sparse fallback.
        if total * itemsize <= _MAX_SINGLE_BLOCK_BYTES:
            # Tiny ragged tensor: single full-array block (always legal).
            x2d = x.reshape(1, total)
            out2d = pl.pallas_call(
                _copy_kernel,
                out_shape=jax.ShapeDtypeStruct((1, total), x.dtype),
                grid=(1,),
                in_specs=[pl.BlockSpec((1, total), lambda i: (0, 0))],
                out_specs=pl.BlockSpec((1, total), lambda i: (0, 0)),
                compiler_params=pltpu.CompilerParams(
                    dimension_semantics=("arbitrary",),
                    vmem_limit_bytes=_VMEM_LIMIT_BYTES,
                ),
            )(x2d)
            return out2d.reshape(orig_shape)
        # Large ragged tensor: hand back to XLA (exact identity, no VMEM risk).
        return x

    rows = total // cols
    x2d = x.reshape(rows, cols)
    tile_r = _pick_tile_rows(rows, cols, itemsize)
    grid = (pl.cdiv(rows, tile_r),)

    out2d = pl.pallas_call(
        _copy_kernel,
        out_shape=jax.ShapeDtypeStruct((rows, cols), x.dtype),
        grid=grid,
        in_specs=[pl.BlockSpec((tile_r, cols), lambda i: (i, 0))],
        out_specs=pl.BlockSpec((tile_r, cols), lambda i: (i, 0)),
        compiler_params=pltpu.CompilerParams(
            dimension_semantics=("parallel",),   # lets v7x shard the copy over both TCs
            vmem_limit_bytes=_VMEM_LIMIT_BYTES,
        ),
    )(x2d)
    return out2d.reshape(orig_shape)


def no_de_rpe_forward(x: jax.Array, *, force_kernel: bool = False) -> jax.Array:
    """Pallas implementation of NoDeRpe.forward: returns x unchanged.

    Default path is a zero-cost identity (no pallas_call, no HBM traffic).
    `force_kernel=True` routes through the Pallas streaming copy (used when a
    kernel boundary is explicitly required, e.g. for testing).
    """
    if not force_kernel or x.ndim == 0 or x.size == 0:
        return x
    return _pallas_identity_copy(x)


if __name__ == "__main__":
    key = jax.random.PRNGKey(0)

    # Primary check: small NCHW feature map (lane-dense path, total % 128 == 0).
    x = jax.random.normal(key, (2, 4, 16, 16), dtype=jnp.float32)
    y = no_de_rpe_forward(x, force_kernel=True)
    jax.block_until_ready(y)
    assert y.shape == x.shape and y.dtype == x.dtype
    assert bool(jnp.array_equal(y, x))

    # Secondary check: odd spatial size exercising the lane-sparse single-block fallback.
    x2 = jax.random.normal(jax.random.PRNGKey(1), (1, 3, 7, 7), dtype=jnp.float32)
    y2 = no_de_rpe_forward(x2, force_kernel=True)
    jax.block_until_ready(y2)
    assert y2.shape == x2.shape and y2.dtype == x2.dtype
    assert bool(jnp.array_equal(y2, x2))

    # Tertiary check: the default (optimal) path is a pure identity.
    y3 = no_de_rpe_forward(x)
    jax.block_until_ready(y3)
    assert bool(jnp.array_equal(y3, x))

    print("KERNEL_OK")
</pallas_src>

<mosaic_0001>
module attributes {stable_mosaic.version = 11 : i64} {
  func.func @_copy_kernel(%arg0: i32, %arg1: memref<1x2048xf32, #tpu.memory_space<vmem>>, %arg2: memref<1x2048xf32, #tpu.memory_space<vmem>>) attributes {dimension_semantics = [#tpu.dimension_semantics<parallel>], iteration_bounds = array<i64: 1>, scalar_prefetch = 0 : i64, scratch_operands = 0 : i64, tpu.core_type = #tpu.core_type<tc>, window_params = [{transform_indices = @transform_0, window_bounds = array<i64: 1, 2048>}, {transform_indices = @transform_1, window_bounds = array<i64: 1, 2048>}]} {
    %c0 = arith.constant 0 : index
    %c0_0 = arith.constant 0 : index
    %0 = vector.load %arg1[%c0, %c0_0] : memref<1x2048xf32, #tpu.memory_space<vmem>>, vector<1x2048xf32>
    %c0_1 = arith.constant 0 : index
    %c0_2 = arith.constant 0 : index
    %1 = vector.load %arg2[%c0_1, %c0_2] : memref<1x2048xf32, #tpu.memory_space<vmem>>, vector<1x2048xf32>
    tpu.vector_store %arg2[%c0_1, %c0_2], %0 {strides = array<i32>} : memref<1x2048xf32, #tpu.memory_space<vmem>>, vector<1x2048xf32>,
    return
  }
  func.func @transform_0(%arg0: i32) -> (i32, i32) {
    %c0_i32 = arith.constant 0 : i32
    %c0_i32_0 = arith.constant 0 : i32
    return %arg0, %c0_i32 : i32, i32
  }
  func.func @transform_1(%arg0: i32) -> (i32, i32) {
    %c0_i32 = arith.constant 0 : i32
    %c0_i32_0 = arith.constant 0 : i32
    return %arg0, %c0_i32 : i32, i32
  }
}

</mosaic_0001>

<bundles_post_ra>
// kernel: tpu_custom_call.1
= control target key start
LH: loop header
LB: loop body
LE: loop exit
PB: predicated region body
PF: predicated region fallthrough
CT: control target
= control target key end

     0   :  { %6 = vsyncpa [#allocation3], 0  ;;  %s126_s0 = inlined_call_operand.hbm [shape: f32[1,2048], index: 0, kind: input, shape index: {}]   ;;  %s127_s1 = inlined_call_operand.hbm [shape: f32[1,2048], index: 1, kind: output, shape index: {}]  }
   0x1   :  { %7 = vsyncpa [#allocation4], 0  ;;  %s90_s6 = smov [#allocation2]   ;;  %s42_s10 = scalar_lea.hbm %s126_s0, 256 }
   0x2   :  { %s14_s7 = sshll.u32 %s90_s6, 4  ;;  %p43_p0 = scmp.ne.s32.totalorder %s126_s0, %s42_s10  ;;  %s15_s7 = int_to_ptr.vmem [resolvable:$true] %s14_s7 }
   0x3   :  { %p46_p1 = scmp.lt.u32.totalorder %s42_s10, %s126_s0 }
   0x5   :  { %p48_p2 = pnand %p46_p1, %p43_p0 }
   0x7   :  { %51 = shalt.err (!%p48_p2)
}
   0x8   :  { %s52_s15 = scalar_lea.vmem %s15_s7, 256  ;;  %p57_p4 = scmp.lt.s32.totalorder %s15_s7, %s15_s7 }
   0x9   :  { %p53_p3 = scmp.ne.s32.totalorder %s15_s7, %s52_s15  ;;  %p58_p5 = scmp.lt.s32.totalorder %s52_s15, %s52_s15 }
   0xb   :  { %p59_p6 = por %p58_p5, %p57_p4 }
   0xd   :  { %p60_p7 = pnand %p59_p6, %p53_p3 }
   0xf   :  { %63 = shalt.err (!%p60_p7)
}
  0x10   :  { %17 = dma.hbm_to_vmem [thread:$0]  %s126_s0, 256, %s15_s7, [#allocation3]  }
  0x11   :  { %86 = dma.done.wait [#allocation3], 256  }
  0x12   :  { %87 = vsyncadd [#allocation3], 4294967040  ;;  %s91_s18 = smov [#allocation5]   ;;  %v21_v0 = vld [vmem:[#allocation2] sm:$0xff]  ;;  %v22_v1 = vld [vmem:[#allocation2 + $0x8] sm:$0xff] }
  0x13   :  { %s31_s19 = sshll.u32 %s91_s18, 4  ;;  %23 = vst [vmem:[#allocation5] sm:$0xff] %v21_v0  ;;  %24 = vst [vmem:[#allocation5 + $0x8] sm:$0xff] %v22_v1  ;;  %s32_s19 = int_to_ptr.vmem [resolvable:$true] %s31_s19 }
  0x14   :  { %s64_s20 = scalar_lea.vmem %s32_s19, 256  ;;  %p69_p9 = scmp.lt.s32.totalorder %s32_s19, %s32_s19 }
  0x15   :  { %p65_p8 = scmp.ne.s32.totalorder %s32_s19, %s64_s20  ;;  %p70_p10 = scmp.lt.s32.totalorder %s64_s20, %s64_s20 }
  0x17   :  { %p71_p11 = por %p70_p10, %p69_p9 }
  0x19   :  { %p72_p12 = pnand %p71_p11, %p65_p8 }
  0x1b   :  { %75 = shalt.err (!%p72_p12)
}
  0x1c   :  { %s76_s0 = scalar_lea.hbm %s127_s1, 256 }
  0x1d   :  { %p77_p13 = scmp.ne.s32.totalorder %s127_s1, %s76_s0  ;;  %p80_p0 = scmp.lt.u32.totalorder %s76_s0, %s127_s1 }
  0x1f   :  { %p82_p1 = pnand %p80_p0, %p77_p13 }
  0x21   :  { %85 = shalt.err (!%p82_p1)
}
  0x22   :  { %34 = dma.vmem_to_hbm [thread:$0]  %s32_s19, 256, %s127_s1, [#allocation4]  }
  0x23   :  { %88 = dma.done.wait [#allocation4], 256  }
  0x24   :  { %89 = vsyncadd [#allocation4], 4294967040 }
  0x25   :  { %38 = vsyncpa [#allocation3], 1 }
  0x26   :  { %39 = vsyncpa [#allocation4], 1 }

</bundles_post_ra>
